<compile_context>
chip_gen: v5e
topology: v5e:2x2
jax: 0.10.0
libtpu: 0.0.40
codegen_flags: <defaults>
</compile_context>

<pallas_src>
import functools
import math

import jax
import jax.numpy as jnp
from jax.experimental import pallas as pl
from jax.experimental.pallas import tpu as pltpu

_LANE = 128      # lane width (last dim)
_SUBLANE = 8     # f32 sublane tile (second-to-last dim)


def _round_up(n, m):
    return ((n + m - 1) // m) * m


def _pad2d(a, rows, cols):
    return jnp.pad(a, ((0, rows - a.shape[0]), (0, cols - a.shape[1])))


# ----------------------------- Pallas kernel -------------------------------

def _fused_mlp_kernel(x_ref, *refs, num_layers):
    """One batch tile through every layer: h = relu(h @ W_l + b_l); the last
    layer has no ReLU.  refs = (w0, b0, w1, b1, ..., o_ref)."""
    o_ref = refs[-1]
    h = x_ref[...].astype(jnp.float32)                    # (tb, d0)
    for i in range(num_layers):                           # static layer count
        w = refs[2 * i][...]                              # (d_in, d_out_pad)
        b = refs[2 * i + 1][...].astype(jnp.float32)      # (1, d_out_pad)
        # Cast activations to the weight dtype (no-op for f32; enables the
        # optional bf16-weight path) and accumulate in f32 on the MXU.
        h = jnp.dot(h.astype(w.dtype), w,
                    preferred_element_type=jnp.float32) + b
        if i < num_layers - 1:
            h = jnp.maximum(h, 0.0)
    o_ref[...] = h.astype(o_ref.dtype)


# --------------------------- Tiling / VMEM budget ----------------------------

def _choose_batch_tile(batch, dims):
    """Pick (tile_rows, padded_batch).  dims = kernel-visible feature dims."""
    if batch <= _SUBLANE:
        return _SUBLANE, _round_up(batch, _SUBLANE)
    if batch <= _LANE:
        # Split small batches into 2 grid steps so the "parallel" batch axis
        # shards across both TensorCores on v7x (harmless no-op on v5e/v6e).
        tb = _round_up(-(-batch // 2), _SUBLANE)
        return tb, 2 * tb
    # Large batch: bigger tiles amortize the ~0.35us per-grid-step overhead.
    # Only the x / out activation buffers scale with the tile (weights are
    # resident), so budget those and keep the grid length >= 2.
    act_budget = 8 << 20
    for cand in (512, 256):
        act_bytes = 2 * cand * (dims[0] + dims[-1] + max(dims)) * 4
        if act_bytes <= act_budget and _round_up(batch, cand) // cand >= 2:
            return cand, _round_up(batch, cand)
    return _LANE, _round_up(batch, _LANE)


def _vmem_limit_bytes(padded_params, tb, dims, single_buffer_weights):
    buf = 1 if single_buffer_weights else 2
    weight_bytes = sum(
        w.size * w.dtype.itemsize + b.size * b.dtype.itemsize
        for (w, b) in padded_params) * buf
    act_bytes = 2 * tb * (dims[0] + dims[-1] + max(dims)) * 4
    needed = weight_bytes + act_bytes
    # Headroom, but stay under v7x's 64 MiB physical VMEM.
    # TODO(synk): for very large hidden dims (resident weights > ~60 MiB) an
    # inner per-layer column tiling (pltpu.emit_pipeline) would be needed.
    return int(min(max(2 * needed, 32 << 20), 60 << 20))


# ------------------------------- Fused forward -------------------------------

def _fused_mlp_call(padded_params, x_pad, tb, out_dtype,
                    single_buffer_weights, vmem_limit_bytes):
    b_pad, d0 = x_pad.shape
    num_layers = len(padded_params)
    # Resident weights/biases (constant index_map): single-buffering halves
    # their VMEM footprint -- the second pipeline buffer would never be used.
    spec_kwargs = (
        dict(pipeline_mode=pl.Buffered(1)) if single_buffer_weights else {})

    inputs = [x_pad]
    in_specs = [pl.BlockSpec((tb, d0), lambda i: (i, 0))]
    for (w, b) in padded_params:
        d_in, d_out = w.shape
        in_specs.append(
            pl.BlockSpec((d_in, d_out), lambda i: (0, 0), **spec_kwargs))
        in_specs.append(
            pl.BlockSpec((1, d_out), lambda i: (0, 0), **spec_kwargs))
        inputs.extend([w, b])

    out_pad = padded_params[-1][0].shape[1]
    return pl.pallas_call(
        functools.partial(_fused_mlp_kernel, num_layers=num_layers),
        out_shape=jax.ShapeDtypeStruct((b_pad, out_pad), out_dtype),
        grid=(b_pad // tb,),
        in_specs=in_specs,
        out_specs=pl.BlockSpec((tb, out_pad), lambda i: (i, 0)),
        compiler_params=pltpu.CompilerParams(
            dimension_semantics=("parallel",),
            vmem_limit_bytes=vmem_limit_bytes),
    )(*inputs)


def make_forward(out_features, *, single_buffer_weights=True):
    """Build the jitted forward: pad(x) -> fused pallas_call -> slice, all in
    a single dispatch.  Params must already be padded (pad_params)."""

    @jax.jit
    def forward(padded_params, x):
        batch = x.shape[0]
        d0 = padded_params[0][0].shape[0]
        dims = [d0] + [w.shape[1] for (w, _) in padded_params]
        tb, b_pad = _choose_batch_tile(batch, dims)
        x_pad = _pad2d(x, b_pad, d0)
        vmem_limit = _vmem_limit_bytes(padded_params, tb, dims,
                                       single_buffer_weights)
        y_pad = _fused_mlp_call(padded_params, x_pad, tb, x.dtype,
                                single_buffer_weights, vmem_limit)
        return y_pad[:batch, :out_features]

    return forward


# --------------------------- Parameter creation -----------------------------

def _xavier_uniform_relu(key, out_features, in_features, dtype=jnp.float32):
    """nn.init.xavier_uniform_(W, gain=calculate_gain('relu')); returns W.T."""
    gain = math.sqrt(2.0)
    bound = gain * math.sqrt(6.0 / (in_features + out_features))
    w_pt = jax.random.uniform(
        key, (out_features, in_features), dtype=dtype, minval=-bound, maxval=bound
    )
    return w_pt.T  # (in, out) for the kernel


def _linear_bias(key, out_features, in_features, dtype=jnp.float32):
    """nn.Linear default bias init: U(-1/sqrt(fan_in), 1/sqrt(fan_in))."""
    bound = 1.0 / math.sqrt(in_features)
    return jax.random.uniform(
        key, (1, out_features), dtype=dtype, minval=-bound, maxval=bound
    )


def init_model_params(key, inp, outp, hidden, hidden_depth):
    """Linear(inp,hidden)+ReLU, depth*(Linear(hidden,hidden)+ReLU), Linear(hidden,outp)."""
    dims = [(inp, hidden)] + [(hidden, hidden)] * hidden_depth + [(hidden, outp)]
    params = []
    for (d_in, d_out) in dims:
        key, kw, kb = jax.random.split(key, 3)
        params.append(
            (_xavier_uniform_relu(kw, d_out, d_in), _linear_bias(kb, d_out, d_in))
        )
    return params


def pad_params(params, *, pad_first_in=False, param_dtype=None):
    """Zero-pad each layer's feature dims to lane multiples ONCE (outside the
    per-call path).  By default the first layer's input dim is left un-padded
    so x is not inflated 8x in HBM; pad_first_in=True gives the conservative
    fully-padded layout.  param_dtype=jnp.bfloat16 selects the fast/half-VMEM
    weight path (kernel keeps f32 accumulation; ~1e-2 relative tolerance)."""
    padded = []
    for li, (w, b) in enumerate(params):
        d_in, d_out = w.shape
        d_in_p = d_in if (li == 0 and not pad_first_in) else _round_up(d_in, _LANE)
        d_out_p = _round_up(d_out, _LANE)
        wp = _pad2d(w, d_in_p, d_out_p)
        if param_dtype is not None:
            wp = wp.astype(param_dtype)
        bp = _pad2d(b, 1, d_out_p)   # bias stays f32 (added post-matmul in f32)
        padded.append((wp, bp))
    return padded


# ------------------------------ Reference model ------------------------------

def model_forward_ref(params, x):
    """Plain-JAX reference for correctness checking."""
    n = len(params)
    for i, (w, b) in enumerate(params):
        x = x @ w + b
        if i < n - 1:
            x = jnp.maximum(x, 0.0)
    return x


# ----------------------------------- Main ------------------------------------

if __name__ == "__main__":
    # Model(inp=16, outp=8, hidden=32, hidden_depth=2)
    inp, outp, hidden, hidden_depth = 16, 8, 32, 2
    batch = 8
    gamma = 0.01  # only used by relprop (not part of forward) -- kept for parity

    key = jax.random.PRNGKey(0)
    key_params, key_x = jax.random.split(key)

    params = init_model_params(key_params, inp, outp, hidden, hidden_depth)
    x = jax.random.normal(key_x, (batch, inp), dtype=jnp.float32)

    # Fast path: params pre-padded once, un-padded x feature stream,
    # single-buffered resident weights, jitted end-to-end.
    run_params = pad_params(params, pad_first_in=False)
    fwd = make_forward(outp, single_buffer_weights=True)
    try:
        y = jax.block_until_ready(fwd(run_params, x))
    except Exception:
        # Conservative fallback (fully padded dims, default double-buffering)
        # in case pipeline_mode / full-dim blocks are unsupported locally.
        run_params = pad_params(params, pad_first_in=True)
        fwd = make_forward(outp, single_buffer_weights=False)
        y = jax.block_until_ready(fwd(run_params, x))

    # Silent sanity check against a pure-JAX reference (f32 path is exact).
    y_ref = model_forward_ref(params, x)
    assert y.shape == (batch, outp)
    assert jnp.allclose(y, y_ref, atol=1e-5, rtol=1e-5)

    # TODO(synk): relprop (LRP backward relevance propagation) is an autograd-based
    # analysis pass, not part of forward(); it is not implemented here.
    print("KERNEL_OK")
</pallas_src>

<mosaic_0001>
module attributes {stable_mosaic.version = 11 : i64} {
  func.func @_fused_mlp_kernel(%arg0: i32, %arg1: memref<8x16xf32, #tpu.memory_space<vmem>>, %arg2: memref<16x128xf32, #tpu.memory_space<vmem>>, %arg3: memref<1x128xf32, #tpu.memory_space<vmem>>, %arg4: memref<128x128xf32, #tpu.memory_space<vmem>>, %arg5: memref<1x128xf32, #tpu.memory_space<vmem>>, %arg6: memref<128x128xf32, #tpu.memory_space<vmem>>, %arg7: memref<1x128xf32, #tpu.memory_space<vmem>>, %arg8: memref<128x128xf32, #tpu.memory_space<vmem>>, %arg9: memref<1x128xf32, #tpu.memory_space<vmem>>, %arg10: memref<8x128xf32, #tpu.memory_space<vmem>>) attributes {dimension_semantics = [#tpu.dimension_semantics<parallel>], iteration_bounds = array<i64: 1>, scalar_prefetch = 0 : i64, scratch_operands = 0 : i64, tpu.core_type = #tpu.core_type<tc>, window_params = [{transform_indices = @transform_0, window_bounds = array<i64: 8, 16>}, {pipeline_mode = #tpu.pipeline_mode<synchronous>, transform_indices = @transform_1, window_bounds = array<i64: 16, 128>}, {pipeline_mode = #tpu.pipeline_mode<synchronous>, transform_indices = @transform_2, window_bounds = array<i64: 1, 128>}, {pipeline_mode = #tpu.pipeline_mode<synchronous>, transform_indices = @transform_3, window_bounds = array<i64: 128, 128>}, {pipeline_mode = #tpu.pipeline_mode<synchronous>, transform_indices = @transform_4, window_bounds = array<i64: 1, 128>}, {pipeline_mode = #tpu.pipeline_mode<synchronous>, transform_indices = @transform_5, window_bounds = array<i64: 128, 128>}, {pipeline_mode = #tpu.pipeline_mode<synchronous>, transform_indices = @transform_6, window_bounds = array<i64: 1, 128>}, {pipeline_mode = #tpu.pipeline_mode<synchronous>, transform_indices = @transform_7, window_bounds = array<i64: 128, 128>}, {pipeline_mode = #tpu.pipeline_mode<synchronous>, transform_indices = @transform_8, window_bounds = array<i64: 1, 128>}, {transform_indices = @transform_9, window_bounds = array<i64: 8, 128>}]} {
    %c0 = arith.constant 0 : index
    %c0_0 = arith.constant 0 : index
    %0 = vector.load %arg1[%c0, %c0_0] : memref<8x16xf32, #tpu.memory_space<vmem>>, vector<8x16xf32>
    %c0_1 = arith.constant 0 : index
    %c0_2 = arith.constant 0 : index
    %1 = vector.load %arg2[%c0_1, %c0_2] : memref<16x128xf32, #tpu.memory_space<vmem>>, vector<16x128xf32>
    %c0_3 = arith.constant 0 : index
    %c0_4 = arith.constant 0 : index
    %2 = vector.load %arg3[%c0_3, %c0_4] : memref<1x128xf32, #tpu.memory_space<vmem>>, vector<1x128xf32>
    %cst = arith.constant dense<0.000000e+00> : vector<8x128xf32>
    %3 = tpu.matmul %0, %1, %cst {dimension_numbers = #tpu.dot_dimension_numbers<[1], [0], [0], [1], [0, 0, 1, 1], [], []>} : vector<8x16xf32>, vector<16x128xf32>, vector<8x128xf32> -> vector<8x128xf32>
    %4 = vector.broadcast %2 : vector<1x128xf32> to vector<8x128xf32>
    %5 = arith.addf %3, %4 : vector<8x128xf32>
    %cst_5 = arith.constant 0.000000e+00 : f32
    %6 = vector.broadcast %cst_5 : f32 to vector<8x128xf32>
    %7 = arith.maximumf %5, %6 : vector<8x128xf32>
    %c0_6 = arith.constant 0 : index
    %c0_7 = arith.constant 0 : index
    %8 = vector.load %arg4[%c0_6, %c0_7] : memref<128x128xf32, #tpu.memory_space<vmem>>, vector<128x128xf32>
    %c0_8 = arith.constant 0 : index
    %c0_9 = arith.constant 0 : index
    %9 = vector.load %arg5[%c0_8, %c0_9] : memref<1x128xf32, #tpu.memory_space<vmem>>, vector<1x128xf32>
    %cst_10 = arith.constant dense<0.000000e+00> : vector<8x128xf32>
    %10 = tpu.matmul %7, %8, %cst_10 {dimension_numbers = #tpu.dot_dimension_numbers<[1], [0], [0], [1], [0, 0, 1, 1], [], []>} : vector<8x128xf32>, vector<128x128xf32>, vector<8x128xf32> -> vector<8x128xf32>
    %11 = vector.broadcast %9 : vector<1x128xf32> to vector<8x128xf32>
    %12 = arith.addf %10, %11 : vector<8x128xf32>
    %cst_11 = arith.constant 0.000000e+00 : f32
    %13 = vector.broadcast %cst_11 : f32 to vector<8x128xf32>
    %14 = arith.maximumf %12, %13 : vector<8x128xf32>
    %c0_12 = arith.constant 0 : index
    %c0_13 = arith.constant 0 : index
    %15 = vector.load %arg6[%c0_12, %c0_13] : memref<128x128xf32, #tpu.memory_space<vmem>>, vector<128x128xf32>
    %c0_14 = arith.constant 0 : index
    %c0_15 = arith.constant 0 : index
    %16 = vector.load %arg7[%c0_14, %c0_15] : memref<1x128xf32, #tpu.memory_space<vmem>>, vector<1x128xf32>
    %cst_16 = arith.constant dense<0.000000e+00> : vector<8x128xf32>
    %17 = tpu.matmul %14, %15, %cst_16 {dimension_numbers = #tpu.dot_dimension_numbers<[1], [0], [0], [1], [0, 0, 1, 1], [], []>} : vector<8x128xf32>, vector<128x128xf32>, vector<8x128xf32> -> vector<8x128xf32>
    %18 = vector.broadcast %16 : vector<1x128xf32> to vector<8x128xf32>
    %19 = arith.addf %17, %18 : vector<8x128xf32>
    %cst_17 = arith.constant 0.000000e+00 : f32
    %20 = vector.broadcast %cst_17 : f32 to vector<8x128xf32>
    %21 = arith.maximumf %19, %20 : vector<8x128xf32>
    %c0_18 = arith.constant 0 : index
    %c0_19 = arith.constant 0 : index
    %22 = vector.load %arg8[%c0_18, %c0_19] : memref<128x128xf32, #tpu.memory_space<vmem>>, vector<128x128xf32>
    %c0_20 = arith.constant 0 : index
    %c0_21 = arith.constant 0 : index
    %23 = vector.load %arg9[%c0_20, %c0_21] : memref<1x128xf32, #tpu.memory_space<vmem>>, vector<1x128xf32>
    %cst_22 = arith.constant dense<0.000000e+00> : vector<8x128xf32>
    %24 = tpu.matmul %21, %22, %cst_22 {dimension_numbers = #tpu.dot_dimension_numbers<[1], [0], [0], [1], [0, 0, 1, 1], [], []>} : vector<8x128xf32>, vector<128x128xf32>, vector<8x128xf32> -> vector<8x128xf32>
    %25 = vector.broadcast %23 : vector<1x128xf32> to vector<8x128xf32>
    %26 = arith.addf %24, %25 : vector<8x128xf32>
    %c0_23 = arith.constant 0 : index
    %c0_24 = arith.constant 0 : index
    %27 = vector.load %arg10[%c0_23, %c0_24] : memref<8x128xf32, #tpu.memory_space<vmem>>, vector<8x128xf32>
    tpu.vector_store %arg10[%c0_23, %c0_24], %26 {strides = array<i32>} : memref<8x128xf32, #tpu.memory_space<vmem>>, vector<8x128xf32>,
    return
  }
  func.func @transform_0(%arg0: i32) -> (i32, i32) {
    %c0_i32 = arith.constant 0 : i32
    %c0_i32_0 = arith.constant 0 : i32
    return %arg0, %c0_i32 : i32, i32
  }
  func.func @transform_1(%arg0: i32) -> (i32, i32) {
    %c0_i32 = arith.constant 0 : i32
    %c0_i32_0 = arith.constant 0 : i32
    %c0_i32_1 = arith.constant 0 : i32
    return %c0_i32, %c0_i32_0 : i32, i32
  }
  func.func @transform_2(%arg0: i32) -> (i32, i32) {
    %c0_i32 = arith.constant 0 : i32
    %c0_i32_0 = arith.constant 0 : i32
    %c0_i32_1 = arith.constant 0 : i32
    return %c0_i32, %c0_i32_0 : i32, i32
  }
  func.func @transform_3(%arg0: i32) -> (i32, i32) {
    %c0_i32 = arith.constant 0 : i32
    %c0_i32_0 = arith.constant 0 : i32
    %c0_i32_1 = arith.constant 0 : i32
    return %c0_i32, %c0_i32_0 : i32, i32
  }
  func.func @transform_4(%arg0: i32) -> (i32, i32) {
    %c0_i32 = arith.constant 0 : i32
    %c0_i32_0 = arith.constant 0 : i32
    %c0_i32_1 = arith.constant 0 : i32
    return %c0_i32, %c0_i32_0 : i32, i32
  }
  func.func @transform_5(%arg0: i32) -> (i32, i32) {
    %c0_i32 = arith.constant 0 : i32
    %c0_i32_0 = arith.constant 0 : i32
    %c0_i32_1 = arith.constant 0 : i32
    return %c0_i32, %c0_i32_0 : i32, i32
  }
  func.func @transform_6(%arg0: i32) -> (i32, i32) {
    %c0_i32 = arith.constant 0 : i32
    %c0_i32_0 = arith.constant 0 : i32
    %c0_i32_1 = arith.constant 0 : i32
    return %c0_i32, %c0_i32_0 : i32, i32
  }
  func.func @transform_7(%arg0: i32) -> (i32, i32) {
    %c0_i32 = arith.constant 0 : i32
    %c0_i32_0 = arith.constant 0 : i32
    %c0_i32_1 = arith.constant 0 : i32
    return %c0_i32, %c0_i32_0 : i32, i32
  }
  func.func @transform_8(%arg0: i32) -> (i32, i32) {
    %c0_i32 = arith.constant 0 : i32
    %c0_i32_0 = arith.constant 0 : i32
    %c0_i32_1 = arith.constant 0 : i32
    return %c0_i32, %c0_i32_0 : i32, i32
  }
  func.func @transform_9(%arg0: i32) -> (i32, i32) {
    %c0_i32 = arith.constant 0 : i32
    %c0_i32_0 = arith.constant 0 : i32
    return %arg0, %c0_i32 : i32, i32
  }
}

module attributes {stable_mosaic.version = 11 : i64} {
  func.func @_fused_mlp_kernel(%arg0: i32, %arg1: memref<8x128xf32, #tpu.memory_space<vmem>>, %arg2: memref<128x128xf32, #tpu.memory_space<vmem>>, %arg3: memref<1x128xf32, #tpu.memory_space<vmem>>, %arg4: memref<128x128xf32, #tpu.memory_space<vmem>>, %arg5: memref<1x128xf32, #tpu.memory_space<vmem>>, %arg6: memref<128x128xf32, #tpu.memory_space<vmem>>, %arg7: memref<1x128xf32, #tpu.memory_space<vmem>>, %arg8: memref<128x128xf32, #tpu.memory_space<vmem>>, %arg9: memref<1x128xf32, #tpu.memory_space<vmem>>, %arg10: memref<8x128xf32, #tpu.memory_space<vmem>>) attributes {dimension_semantics = [#tpu.dimension_semantics<parallel>], iteration_bounds = array<i64: 1>, scalar_prefetch = 0 : i64, scratch_operands = 0 : i64, tpu.core_type = #tpu.core_type<tc>, window_params = [{transform_indices = @transform_0, window_bounds = array<i64: 8, 128>}, {pipeline_mode = #tpu.pipeline_mode<synchronous>, transform_indices = @transform_1, window_bounds = array<i64: 128, 128>}, {pipeline_mode = #tpu.pipeline_mode<synchronous>, transform_indices = @transform_2, window_bounds = array<i64: 1, 128>}, {pipeline_mode = #tpu.pipeline_mode<synchronous>, transform_indices = @transform_3, window_bounds = array<i64: 128, 128>}, {pipeline_mode = #tpu.pipeline_mode<synchronous>, transform_indices = @transform_4, window_bounds = array<i64: 1, 128>}, {pipeline_mode = #tpu.pipeline_mode<synchronous>, transform_indices = @transform_5, window_bounds = array<i64: 128, 128>}, {pipeline_mode = #tpu.pipeline_mode<synchronous>, transform_indices = @transform_6, window_bounds = array<i64: 1, 128>}, {pipeline_mode = #tpu.pipeline_mode<synchronous>, transform_indices = @transform_7, window_bounds = array<i64: 128, 128>}, {pipeline_mode = #tpu.pipeline_mode<synchronous>, transform_indices = @transform_8, window_bounds = array<i64: 1, 128>}, {transform_indices = @transform_9, window_bounds = array<i64: 8, 128>}]} {
    %c0 = arith.constant 0 : index
    %c0_0 = arith.constant 0 : index
    %0 = vector.load %arg1[%c0, %c0_0] : memref<8x128xf32, #tpu.memory_space<vmem>>, vector<8x128xf32>
    %c0_1 = arith.constant 0 : index
    %c0_2 = arith.constant 0 : index
    %1 = vector.load %arg2[%c0_1, %c0_2] : memref<128x128xf32, #tpu.memory_space<vmem>>, vector<128x128xf32>
    %c0_3 = arith.constant 0 : index
    %c0_4 = arith.constant 0 : index
    %2 = vector.load %arg3[%c0_3, %c0_4] : memref<1x128xf32, #tpu.memory_space<vmem>>, vector<1x128xf32>
    %cst = arith.constant dense<0.000000e+00> : vector<8x128xf32>
    %3 = tpu.matmul %0, %1, %cst {dimension_numbers = #tpu.dot_dimension_numbers<[1], [0], [0], [1], [0, 0, 1, 1], [], []>} : vector<8x128xf32>, vector<128x128xf32>, vector<8x128xf32> -> vector<8x128xf32>
    %4 = vector.broadcast %2 : vector<1x128xf32> to vector<8x128xf32>
    %5 = arith.addf %3, %4 : vector<8x128xf32>
    %cst_5 = arith.constant 0.000000e+00 : f32
    %6 = vector.broadcast %cst_5 : f32 to vector<8x128xf32>
    %7 = arith.maximumf %5, %6 : vector<8x128xf32>
    %c0_6 = arith.constant 0 : index
    %c0_7 = arith.constant 0 : index
    %8 = vector.load %arg4[%c0_6, %c0_7] : memref<128x128xf32, #tpu.memory_space<vmem>>, vector<128x128xf32>
    %c0_8 = arith.constant 0 : index
    %c0_9 = arith.constant 0 : index
    %9 = vector.load %arg5[%c0_8, %c0_9] : memref<1x128xf32, #tpu.memory_space<vmem>>, vector<1x128xf32>
    %cst_10 = arith.constant dense<0.000000e+00> : vector<8x128xf32>
    %10 = tpu.matmul %7, %8, %cst_10 {dimension_numbers = #tpu.dot_dimension_numbers<[1], [0], [0], [1], [0, 0, 1, 1], [], []>} : vector<8x128xf32>, vector<128x128xf32>, vector<8x128xf32> -> vector<8x128xf32>
    %11 = vector.broadcast %9 : vector<1x128xf32> to vector<8x128xf32>
    %12 = arith.addf %10, %11 : vector<8x128xf32>
    %cst_11 = arith.constant 0.000000e+00 : f32
    %13 = vector.broadcast %cst_11 : f32 to vector<8x128xf32>
    %14 = arith.maximumf %12, %13 : vector<8x128xf32>
    %c0_12 = arith.constant 0 : index
    %c0_13 = arith.constant 0 : index
    %15 = vector.load %arg6[%c0_12, %c0_13] : memref<128x128xf32, #tpu.memory_space<vmem>>, vector<128x128xf32>
    %c0_14 = arith.constant 0 : index
    %c0_15 = arith.constant 0 : index
    %16 = vector.load %arg7[%c0_14, %c0_15] : memref<1x128xf32, #tpu.memory_space<vmem>>, vector<1x128xf32>
    %cst_16 = arith.constant dense<0.000000e+00> : vector<8x128xf32>
    %17 = tpu.matmul %14, %15, %cst_16 {dimension_numbers = #tpu.dot_dimension_numbers<[1], [0], [0], [1], [0, 0, 1, 1], [], []>} : vector<8x128xf32>, vector<128x128xf32>, vector<8x128xf32> -> vector<8x128xf32>
    %18 = vector.broadcast %16 : vector<1x128xf32> to vector<8x128xf32>
    %19 = arith.addf %17, %18 : vector<8x128xf32>
    %cst_17 = arith.constant 0.000000e+00 : f32
    %20 = vector.broadcast %cst_17 : f32 to vector<8x128xf32>
    %21 = arith.maximumf %19, %20 : vector<8x128xf32>
    %c0_18 = arith.constant 0 : index
    %c0_19 = arith.constant 0 : index
    %22 = vector.load %arg8[%c0_18, %c0_19] : memref<128x128xf32, #tpu.memory_space<vmem>>, vector<128x128xf32>
    %c0_20 = arith.constant 0 : index
    %c0_21 = arith.constant 0 : index
    %23 = vector.load %arg9[%c0_20, %c0_21] : memref<1x128xf32, #tpu.memory_space<vmem>>, vector<1x128xf32>
    %cst_22 = arith.constant dense<0.000000e+00> : vector<8x128xf32>
    %24 = tpu.matmul %21, %22, %cst_22 {dimension_numbers = #tpu.dot_dimension_numbers<[1], [0], [0], [1], [0, 0, 1, 1], [], []>} : vector<8x128xf32>, vector<128x128xf32>, vector<8x128xf32> -> vector<8x128xf32>
    %25 = vector.broadcast %23 : vector<1x128xf32> to vector<8x128xf32>
    %26 = arith.addf %24, %25 : vector<8x128xf32>
    %c0_23 = arith.constant 0 : index
    %c0_24 = arith.constant 0 : index
    %27 = vector.load %arg10[%c0_23, %c0_24] : memref<8x128xf32, #tpu.memory_space<vmem>>, vector<8x128xf32>
    tpu.vector_store %arg10[%c0_23, %c0_24], %26 {strides = array<i32>} : memref<8x128xf32, #tpu.memory_space<vmem>>, vector<8x128xf32>,
    return
  }
  func.func @transform_0(%arg0: i32) -> (i32, i32) {
    %c0_i32 = arith.constant 0 : i32
    %c0_i32_0 = arith.constant 0 : i32
    return %arg0, %c0_i32 : i32, i32
  }
  func.func @transform_1(%arg0: i32) -> (i32, i32) {
    %c0_i32 = arith.constant 0 : i32
    %c0_i32_0 = arith.constant 0 : i32
    %c0_i32_1 = arith.constant 0 : i32
    return %c0_i32, %c0_i32_0 : i32, i32
  }
  func.func @transform_2(%arg0: i32) -> (i32, i32) {
    %c0_i32 = arith.constant 0 : i32
    %c0_i32_0 = arith.constant 0 : i32
    %c0_i32_1 = arith.constant 0 : i32
    return %c0_i32, %c0_i32_0 : i32, i32
  }
  func.func @transform_3(%arg0: i32) -> (i32, i32) {
    %c0_i32 = arith.constant 0 : i32
    %c0_i32_0 = arith.constant 0 : i32
    %c0_i32_1 = arith.constant 0 : i32
    return %c0_i32, %c0_i32_0 : i32, i32
  }
  func.func @transform_4(%arg0: i32) -> (i32, i32) {
    %c0_i32 = arith.constant 0 : i32
    %c0_i32_0 = arith.constant 0 : i32
    %c0_i32_1 = arith.constant 0 : i32
    return %c0_i32, %c0_i32_0 : i32, i32
  }
  func.func @transform_5(%arg0: i32) -> (i32, i32) {
    %c0_i32 = arith.constant 0 : i32
    %c0_i32_0 = arith.constant 0 : i32
    %c0_i32_1 = arith.constant 0 : i32
    return %c0_i32, %c0_i32_0 : i32, i32
  }
  func.func @transform_6(%arg0: i32) -> (i32, i32) {
    %c0_i32 = arith.constant 0 : i32
    %c0_i32_0 = arith.constant 0 : i32
    %c0_i32_1 = arith.constant 0 : i32
    return %c0_i32, %c0_i32_0 : i32, i32
  }
  func.func @transform_7(%arg0: i32) -> (i32, i32) {
    %c0_i32 = arith.constant 0 : i32
    %c0_i32_0 = arith.constant 0 : i32
    %c0_i32_1 = arith.constant 0 : i32
    return %c0_i32, %c0_i32_0 : i32, i32
  }
  func.func @transform_8(%arg0: i32) -> (i32, i32) {
    %c0_i32 = arith.constant 0 : i32
    %c0_i32_0 = arith.constant 0 : i32
    %c0_i32_1 = arith.constant 0 : i32
    return %c0_i32, %c0_i32_0 : i32, i32
  }
  func.func @transform_9(%arg0: i32) -> (i32, i32) {
    %c0_i32 = arith.constant 0 : i32
    %c0_i32_0 = arith.constant 0 : i32
    return %arg0, %c0_i32 : i32, i32
  }
}

</mosaic_0001>

<bundles_post_ra>
// kernel: forward.1
= control target key start
LH: loop header
LB: loop body
LE: loop exit
PB: predicated region body
PF: predicated region fallthrough
CT: control target
= control target key end

     0   :  { %14 = vsyncpa [#allocation3], 0  ;;  %s591_s0 = inlined_call_operand.hbm [shape: f32[8,16], index: 0, kind: input, shape index: {}]   ;;  %s592_s1 = inlined_call_operand.hbm [shape: f32[16,128], index: 1, kind: input, shape index: {}]   ;;  %s593_s2 = inlined_call_operand.hbm [shape: f32[1,128], index: 2, kind: input, shape index: {}]   ;;  %s594_s3 = inlined_call_operand.hbm [shape: f32[128,128], index: 3, kind: input, shape index: {}]   ;;  %s595_s4 = inlined_call_operand.vmem [shape: f32[1,128], index: 4, kind: input, shape index: {}]   ;;  %s596_s5 = inlined_call_operand.hbm [shape: f32[128,128], index: 5, kind: input, shape index: {}]   ;;  %s597_s6 = inlined_call_operand.vmem [shape: f32[1,128], index: 6, kind: input, shape index: {}]   ;;  %s598_s7 = inlined_call_operand.hbm [shape: f32[128,128], index: 7, kind: input, shape index: {}]   ;;  %s599_s8 = inlined_call_operand.vmem [shape: f32[1,128], index: 8, kind: input, shape index: {}]   ;;  %s600_s9 = inlined_call_operand.hbm [shape: f32[8,128], index: 9, kind: output, shape index: {}]  }
   0x1   :  { %15 = vsyncpa [#allocation6], 0 }
   0x2   :  { %16 = vsyncpa [#allocation9], 0 }
   0x3   :  { %17 = vsyncpa [#allocation12], 0  ;;  %s34_s11 = sshll.u32 %s592_s1, 4  ;;  %s35_s11 = int_to_ptr.hbm [resolvable:$true] %s34_s11 }
   0x4   :  { %18 = vsyncpa [#allocation4], 0  ;;  %s490_s12 = smov [#allocation5]   ;;  %s58_s16 = sshll.u32 %s594_s3, 4  ;;  %s59_s16 = int_to_ptr.hbm [resolvable:$true] %s58_s16 }
   0x5   :  { %s36_s13 = sshll.u32 %s490_s12, 4  ;;  %s491_s17 = smov 128   ;;  %s37_s13 = int_to_ptr.vmem [resolvable:$true] %s36_s13 }
   0x6   :  { %s492_s18 = smov 8   ;;  %s493_s19 = smov [#allocation8]  }
   0x7   :  { %42 = dma.hbm_to_vmem [thread:$0]  %s35_s11, 256, %s37_s13, [#allocation6], %s491_s17, %s491_s17, %s492_s18  }
   0x8   :  { %s60_s20 = sshll.u32 %s493_s19, 4  ;;  %s24_s22 = sshll.u32 %s591_s0, 4  ;;  %s61_s20 = int_to_ptr.vmem [resolvable:$true] %s60_s20  ;;  %s25_s22 = int_to_ptr.hbm [resolvable:$true] %s24_s22 }
   0x9   :  { %66 = dma.hbm_to_vmem [thread:$0]  %s59_s16, 2048, %s61_s20, [#allocation9], %s491_s17, %s491_s17, %s492_s18  }
   0xa   :  { %s48_s24 = sshll.u32 %s593_s2, 4  ;;  %s494_s25 = smov [#allocation2]   ;;  %s49_s24 = int_to_ptr.hbm [resolvable:$true] %s48_s24 }
   0xb   :  { %s26_s26 = sshll.u32 %s494_s25, 4  ;;  %s495_s27 = smov [#allocation7]   ;;  %s27_s26 = int_to_ptr.vmem [resolvable:$true] %s26_s26 }
   0xc   :  { %29 = dma.hbm_to_vmem [thread:$0]  %s25_s22, 128, %s27_s26, [#allocation3]  }
   0xd   :  { %s50_s28 = sshll.u32 %s495_s27, 4  ;;  %s73_s0 = sshll.u32 %s596_s5, 4  ;;  %s51_s28 = int_to_ptr.vmem [resolvable:$true] %s50_s28  ;;  %s74_s0 = int_to_ptr.hbm [resolvable:$true] %s73_s0 }
   0xe   :  { %53 = dma.hbm_to_vmem [thread:$0]  %s49_s24, 16, %s51_s28, [#allocation6]  }
   0xf   :  { %s88_s12 = sshll.u32 %s598_s7, 4  ;;  %s496_s13 = smov [#allocation10]   ;;  %s89_s12 = int_to_ptr.hbm [resolvable:$true] %s88_s12 }
  0x10   :  { %s75_s2 = sshll.u32 %s496_s13, 4  ;;  %s497_s14 = smov [#allocation11]   ;;  %s76_s2 = int_to_ptr.vmem [resolvable:$true] %s75_s2 }
  0x11   :  { %81 = dma.hbm_to_vmem [thread:$0]  %s74_s0, 2048, %s76_s2, [#allocation9], %s491_s17, %s491_s17, %s492_s18  }
  0x12   :  { %s90_s15 = sshll.u32 %s497_s14, 4  ;;  %s91_s15 = int_to_ptr.vmem [resolvable:$true] %s90_s15 }
  0x13   :  { %96 = dma.hbm_to_vmem [thread:$0]  %s89_s12, 2048, %s91_s15, [#allocation12], %s491_s17, %s491_s17, %s492_s18  }
  0x14   :  { %480 = dma.done.wait [#allocation3], 128  }
  0x15   :  { %481 = vsyncadd [#allocation3], 4294967168 }
  0x16   :  { %482 = dma.done.wait [#allocation6], 272  }
  0x17   :  { %483 = vsyncadd [#allocation6], 4294967024 }
  0x18   :  { %484 = dma.done.wait [#allocation9], 4096  }
  0x19   :  { %485 = vsyncadd [#allocation9], 4294963200 }
  0x1a   :  { %486 = dma.done.wait [#allocation12], 2048  }
  0x1b   :  { %487 = vsyncadd [#allocation12], 4294965248  ;;  %v125_v0 = vld [vmem:[#allocation5 + $0x8] sm:$0xff]  ;;  %v124_v1 = vld [vmem:[#allocation5] sm:$0xff]  ;;  %vm130_vm0 = vcmask 130048   ;;  %s498_s19 = smov [#allocation13]  }
  0x1c   :  { %148 = vmatpush.msra.mxu0 %v125_v0  ;;  %v123_v2 = vld [vmem:[#allocation2] sm:$0xff]  ;;  %v170_v3 = vld [vmem:[#allocation8 + $0x78] sm:$0xff]  ;;  %v169_v4 = vld [vmem:[#allocation8 + $0x70] sm:$0xff]  ;;  %s283_s20 = sshll.u32 %s498_s19, 4  ;;  %s285_s22 = sshll.u32 %s600_s9, 4  ;;  %s284_s20 = int_to_ptr.vmem [resolvable:$true] %s283_s20  ;;  %s286_s22 = int_to_ptr.hbm [resolvable:$true] %s285_s22 }
  0x1d   :  { %175 = vmatpush.msra.mxu1 %v170_v3  ;;  %v168_v5 = vld [vmem:[#allocation8 + $0x68] sm:$0xff]  ;;  %v167_v6 = vld [vmem:[#allocation8 + $0x60] sm:$0xff]  ;;  %v166_v7 = vld [vmem:[#allocation8 + $0x58] sm:$0xff] }
  0x1e   :  { %149 = vmatpush.msra.mxu0 %v124_v1  ;;  %v165_v8 = vld [vmem:[#allocation8 + $0x50] sm:$0xff]  ;;  %v164_v9 = vld [vmem:[#allocation8 + $0x48] sm:$0xff]  ;;  %v163_v10 = vld [vmem:[#allocation8 + $0x40] sm:$0xff] }
  0x1f   :  { %298 = vmatmul.msk.f32.vlgmr.msra.gmra.mxu0 %vm130_vm0, %v123_v2  ;;  %176 = vmatpush.msra.mxu1 %v169_v4  ;;  %v162_v11 = vld [vmem:[#allocation8 + $0x38] sm:$0xff]  ;;  %v161_v12 = vld [vmem:[#allocation8 + $0x30] sm:$0xff]  ;;  %v160_v13 = vld [vmem:[#allocation8 + $0x28] sm:$0xff] }
  0x20   :  { %v159_v14 = vld [vmem:[#allocation8 + $0x20] sm:$0xff]  ;;  %v158_v15 = vld [vmem:[#allocation8 + $0x18] sm:$0xff]  ;;  %v157_v16 = vld [vmem:[#allocation8 + $0x10] sm:$0xff] }
  0x21   :  { %177 = vmatpush.msra.mxu1 %v168_v5  ;;  %v156_v17 = vld [vmem:[#allocation8 + $0x8] sm:$0xff]  ;;  %v155_v18 = vld [vmem:[#allocation8] sm:$0xff]  ;;  %v211_v19 = vld [vmem:[#allocation10 + $0x78] sm:$0xff] }
  0x22   :  { %v210_v20 = vld [vmem:[#allocation10 + $0x70] sm:$0xff]  ;;  %216 = vmatpush.msra.mxu2 %v211_v19  ;;  %v209_v21 = vld [vmem:[#allocation10 + $0x68] sm:$0xff]  ;;  %v208_v22 = vld [vmem:[#allocation10 + $0x60] sm:$0xff] }
  0x23   :  { %178 = vmatpush.msra.mxu1 %v167_v6  ;;  %v207_v23 = vld [vmem:[#allocation10 + $0x58] sm:$0xff]  ;;  %v206_v24 = vld [vmem:[#allocation10 + $0x50] sm:$0xff]  ;;  %v205_v25 = vld [vmem:[#allocation10 + $0x48] sm:$0xff] }
  0x24   :  { %217 = vmatpush.msra.mxu2 %v210_v20  ;;  %v204_v26 = vld [vmem:[#allocation10 + $0x40] sm:$0xff]  ;;  %v203_v27 = vld [vmem:[#allocation10 + $0x38] sm:$0xff]  ;;  %v202_v28 = vld [vmem:[#allocation10 + $0x30] sm:$0xff] }
  0x25   :  { %179 = vmatpush.msra.mxu1 %v166_v7  ;;  %v201_v29 = vld [vmem:[#allocation10 + $0x28] sm:$0xff]  ;;  %v200_v30 = vld [vmem:[#allocation10 + $0x20] sm:$0xff]  ;;  %v199_v31 = vld [vmem:[#allocation10 + $0x18] sm:$0xff] }
  0x26   :  { %218 = vmatpush.msra.mxu2 %v209_v21  ;;  %v308_v32 = vld [vmem:[#allocation7] ss:$0 sm:$0xff]  ;;  %v198_v36 = vld [vmem:[#allocation10 + $0x10] sm:$0xff]  ;;  %v197_v37 = vld [vmem:[#allocation10 + $0x8] sm:$0xff] }
  0x27   :  { %180 = vmatpush.msra.mxu1 %v165_v8  ;;  %v196_v38 = vld [vmem:[#allocation10] sm:$0xff]  ;;  %v252_v39 = vld [vmem:[#allocation11 + $0x78] sm:$0xff]  ;;  %v251_v40 = vld [vmem:[#allocation11 + $0x70] sm:$0xff] }
  0x28   :  { %219 = vmatpush.msra.mxu2 %v208_v22  ;;  %257 = vmatpush.msra.mxu3 %v252_v39  ;;  %v250_v41 = vld [vmem:[#allocation11 + $0x68] sm:$0xff]  ;;  %v249_v42 = vld [vmem:[#allocation11 + $0x60] sm:$0xff]  ;;  %v248_v43 = vld [vmem:[#allocation11 + $0x58] sm:$0xff] }
  0x29   :  { %181 = vmatpush.msra.mxu1 %v164_v9  ;;  %v247_v44 = vld [vmem:[#allocation11 + $0x50] sm:$0xff]  ;;  %v246_v45 = vld [vmem:[#allocation11 + $0x48] sm:$0xff]  ;;  %v245_v46 = vld [vmem:[#allocation11 + $0x40] sm:$0xff] }
  0x2a   :  { %220 = vmatpush.msra.mxu2 %v207_v23  ;;  %258 = vmatpush.msra.mxu3 %v251_v40  ;;  %v244_v47 = vld [vmem:[#allocation11 + $0x38] sm:$0xff]  ;;  %v243_v48 = vld [vmem:[#allocation11 + $0x30] sm:$0xff]  ;;  %v242_v49 = vld [vmem:[#allocation11 + $0x28] sm:$0xff] }
  0x2b   :  { %182 = vmatpush.msra.mxu1 %v163_v10  ;;  %v241_v50 = vld [vmem:[#allocation11 + $0x20] sm:$0xff]  ;;  %v240_v51 = vld [vmem:[#allocation11 + $0x18] sm:$0xff]  ;;  %v239_v56 = vld [vmem:[#allocation11 + $0x10] sm:$0xff] }
  0x2c   :  { %221 = vmatpush.msra.mxu2 %v206_v24  ;;  %259 = vmatpush.msra.mxu3 %v250_v41  ;;  %v309_v52 = vld [vmem:[%s595_s4] ss:$0 sm:$0xff]  ;;  %v238_v57 = vld [vmem:[#allocation11 + $0x8] sm:$0xff] }
  0x2d   :  { %183 = vmatpush.msra.mxu1 %v162_v11  ;;  %v237_v58 = vld [vmem:[#allocation11] sm:$0xff] }
  0x2e   :  { %222 = vmatpush.msra.mxu2 %v205_v25  ;;  %260 = vmatpush.msra.mxu3 %v249_v42  ;;  %v310_v59 = vld [vmem:[%s597_s6] ss:$0 sm:$0xff] }
  0x2f   :  { %184 = vmatpush.msra.mxu1 %v161_v12  ;;  %v311_v63 = vld [vmem:[%s599_s8] ss:$0 sm:$0xff] }
  0x30   :  { %223 = vmatpush.msra.mxu2 %v204_v26  ;;  %261 = vmatpush.msra.mxu3 %v248_v43 }
  0x31   :  { %185 = vmatpush.msra.mxu1 %v160_v13 }
  0x32   :  { %224 = vmatpush.msra.mxu2 %v203_v27  ;;  %262 = vmatpush.msra.mxu3 %v247_v44 }
  0x33   :  { %186 = vmatpush.msra.mxu1 %v159_v14 }
  0x34   :  { %225 = vmatpush.msra.mxu2 %v202_v28  ;;  %263 = vmatpush.msra.mxu3 %v246_v45 }
  0x35   :  { %187 = vmatpush.msra.mxu1 %v158_v15 }
  0x36   :  { %226 = vmatpush.msra.mxu2 %v201_v29  ;;  %264 = vmatpush.msra.mxu3 %v245_v46 }
  0x37   :  { %188 = vmatpush.msra.mxu1 %v157_v16 }
  0x38   :  { %227 = vmatpush.msra.mxu2 %v200_v30  ;;  %265 = vmatpush.msra.mxu3 %v244_v47 }
  0x39   :  { %189 = vmatpush.msra.mxu1 %v156_v17 }
  0x3a   :  { %228 = vmatpush.msra.mxu2 %v199_v31  ;;  %266 = vmatpush.msra.mxu3 %v243_v48 }
  0x3b   :  { %190 = vmatpush.msra.mxu1 %v155_v18 }
  0x3c   :  { %229 = vmatpush.msra.mxu2 %v198_v36  ;;  %267 = vmatpush.msra.mxu3 %v242_v49 }
  0x3e   :  { %230 = vmatpush.msra.mxu2 %v197_v37  ;;  %268 = vmatpush.msra.mxu3 %v241_v50 }
  0x40   :  { %231 = vmatpush.msra.mxu2 %v196_v38  ;;  %269 = vmatpush.msra.mxu3 %v240_v51 }
  0x42   :  { %270 = vmatpush.msra.mxu3 %v239_v56 }
  0x44   :  { %271 = vmatpush.msra.mxu3 %v238_v57 }
  0x46   :  { %272 = vmatpush.msra.mxu3 %v237_v58 }
  0x9c   :  { %v151_v33 = vpop.f32.mrf.mxu0 }
  0x9d   :  { %v152_v34 = vadd.f32 %v308_v32, %v151_v33 }
  0x9f   :  { %v154_v35 = vmax.f32 %v152_v34, 0.0 }
  0xa1   :  { %191 = vmatmul.f32.vlgmr.msra.gmra.mxu1 %v154_v35 }
 0x11e   :  { %v192_v53 = vpop.f32.mrf.mxu1 }
 0x11f   :  { %v193_v54 = vadd.f32 %v309_v52, %v192_v53 }
 0x121   :  { %v195_v55 = vmax.f32 %v193_v54, 0.0 }
 0x123   :  { %232 = vmatmul.f32.vlgmr.msra.gmra.mxu2 %v195_v55 }
 0x1a6   :  { %v233_v60 = vpop.f32.mrf.mxu2 }
 0x1a7   :  { %v234_v61 = vadd.f32 %v310_v59, %v233_v60 }
 0x1a9   :  { %v236_v62 = vmax.f32 %v234_v61, 0.0 }
 0x1ab   :  { %273 = vmatmul.f32.vlgmr.msra.gmra.mxu3 %v236_v62 }
 0x22e   :  { %v274_v0 = vpop.f32.mrf.mxu3 }
 0x22f   :  { %v275_v1 = vadd.f32 %v311_v63, %v274_v0 }
 0x231   :  { %277 = vst [vmem:[#allocation13] sm:$0xff] %v275_v1 }
 0x232   :  { %288 = dma.vmem_to_hbm [thread:$0]  %s284_s20, 128, %s286_s22, [#allocation4]  }
 0x233   :  { %488 = dma.done.wait [#allocation4], 128  }
 0x234   :  { %489 = vsyncadd [#allocation4], 4294967168 }
 0x235   :  { %293 = vsyncpa [#allocation3], 1 }
 0x236   :  { %294 = vsyncpa [#allocation6], 1 }
 0x237   :  { %295 = vsyncpa [#allocation9], 1 }
 0x238   :  { %296 = vsyncpa [#allocation12], 1 }
 0x239   :  { %297 = vsyncpa [#allocation4], 1 }

// kernel: forward.1
= control target key start
LH: loop header
LB: loop body
LE: loop exit
PB: predicated region body
PF: predicated region fallthrough
CT: control target
= control target key end

     0   :  { %14 = vsyncpa [#allocation3], 0  ;;  %s506_s0 = inlined_call_operand.vmem [shape: f32[8,128], index: 0, kind: input, shape index: {}]   ;;  %s507_s1 = inlined_call_operand.hbm [shape: f32[128,128], index: 1, kind: input, shape index: {}]   ;;  %s508_s2 = inlined_call_operand.vmem [shape: f32[1,128], index: 2, kind: input, shape index: {}]   ;;  %s509_s3 = inlined_call_operand.hbm [shape: f32[128,128], index: 3, kind: input, shape index: {}]   ;;  %s510_s4 = inlined_call_operand.vmem [shape: f32[1,128], index: 4, kind: input, shape index: {}]   ;;  %s511_s5 = inlined_call_operand.hbm [shape: f32[128,128], index: 5, kind: input, shape index: {}]   ;;  %s512_s6 = inlined_call_operand.vmem [shape: f32[1,128], index: 6, kind: input, shape index: {}]   ;;  %s513_s7 = inlined_call_operand.hbm [shape: f32[128,128], index: 7, kind: input, shape index: {}]   ;;  %s514_s8 = inlined_call_operand.vmem [shape: f32[1,128], index: 8, kind: input, shape index: {}]   ;;  %s515_s9 = inlined_call_operand.hbm [shape: f32[8,128], index: 9, kind: output, shape index: {}]  }
   0x1   :  { %15 = vsyncpa [#allocation6], 0 }
   0x2   :  { %16 = vsyncpa [#allocation9], 0 }
   0x3   :  { %17 = vsyncpa [#allocation4], 0  ;;  %s39_s11 = sshll.u32 %s509_s3, 4  ;;  %s419_s12 = smov [#allocation5]   ;;  %s40_s11 = int_to_ptr.hbm [resolvable:$true] %s39_s11 }
   0x4   :  { %s41_s13 = sshll.u32 %s419_s12, 4  ;;  %s24_s16 = sshll.u32 %s507_s1, 4  ;;  %s42_s13 = int_to_ptr.vmem [resolvable:$true] %s41_s13  ;;  %s25_s16 = int_to_ptr.hbm [resolvable:$true] %s24_s16 }
   0x5   :  { %s420_s17 = smov 128   ;;  %s421_s18 = smov 8  }
   0x6   :  { %47 = dma.hbm_to_vmem [thread:$0]  %s40_s11, 2048, %s42_s13, [#allocation6], %s420_s17, %s420_s17, %s421_s18  }
   0x7   :  { %s422_s19 = smov [#allocation2]   ;;  %s54_s23 = sshll.u32 %s511_s5, 4  ;;  %s55_s23 = int_to_ptr.hbm [resolvable:$true] %s54_s23 }
   0x8   :  { %s26_s20 = sshll.u32 %s422_s19, 4  ;;  %s69_s25 = sshll.u32 %s513_s7, 4  ;;  %s27_s20 = int_to_ptr.vmem [resolvable:$true] %s26_s20  ;;  %s70_s25 = int_to_ptr.hbm [resolvable:$true] %s69_s25 }
   0x9   :  { %32 = dma.hbm_to_vmem [thread:$0]  %s25_s16, 2048, %s27_s20, [#allocation3], %s420_s17, %s420_s17, %s421_s18  }
   0xa   :  { %s423_s26 = smov [#allocation7]   ;;  %s424_s1 = smov [#allocation8]  }
   0xb   :  { %s56_s27 = sshll.u32 %s423_s26, 4  ;;  %s71_s28 = sshll.u32 %s424_s1, 4  ;;  %s57_s27 = int_to_ptr.vmem [resolvable:$true] %s56_s27  ;;  %s72_s28 = int_to_ptr.vmem [resolvable:$true] %s71_s28 }
   0xc   :  { %62 = dma.hbm_to_vmem [thread:$0]  %s55_s23, 2048, %s57_s27, [#allocation6], %s420_s17, %s420_s17, %s421_s18  }
   0xd   :  { %77 = dma.hbm_to_vmem [thread:$0]  %s70_s25, 2048, %s72_s28, [#allocation9], %s420_s17, %s420_s17, %s421_s18  }
   0xe   :  { %411 = dma.done.wait [#allocation3], 2048  }
   0xf   :  { %412 = vsyncadd [#allocation3], 4294965248 }
  0x10   :  { %413 = dma.done.wait [#allocation6], 4096  }
  0x11   :  { %414 = vsyncadd [#allocation6], 4294963200 }
  0x12   :  { %415 = dma.done.wait [#allocation9], 2048  }
  0x13   :  { %416 = vsyncadd [#allocation9], 4294965248  ;;  %v112_v0 = vld [vmem:[#allocation2 + $0x78] sm:$0xff]  ;;  %v111_v1 = vld [vmem:[#allocation2 + $0x70] sm:$0xff]  ;;  %s425_s13 = smov [#allocation10]   ;;  %s268_s17 = sshll.u32 %s515_s9, 4  ;;  %s269_s17 = int_to_ptr.hbm [resolvable:$true] %s268_s17 }
  0x14   :  { %117 = vmatpush.msra.mxu0 %v112_v0  ;;  %v110_v2 = vld [vmem:[#allocation2 + $0x68] sm:$0xff]  ;;  %v109_v3 = vld [vmem:[#allocation2 + $0x60] sm:$0xff]  ;;  %v153_v4 = vld [vmem:[#allocation5 + $0x78] sm:$0xff]  ;;  %s266_s14 = sshll.u32 %s425_s13, 4  ;;  %s267_s14 = int_to_ptr.vmem [resolvable:$true] %s266_s14 }
  0x15   :  { %v108_v5 = vld [vmem:[#allocation2 + $0x58] sm:$0xff]  ;;  %158 = vmatpush.msra.mxu1 %v153_v4  ;;  %v152_v6 = vld [vmem:[#allocation5 + $0x70] sm:$0xff]  ;;  %v151_v7 = vld [vmem:[#allocation5 + $0x68] sm:$0xff] }
  0x16   :  { %118 = vmatpush.msra.mxu0 %v111_v1  ;;  %v107_v8 = vld [vmem:[#allocation2 + $0x50] sm:$0xff]  ;;  %v150_v9 = vld [vmem:[#allocation5 + $0x60] sm:$0xff]  ;;  %v106_v10 = vld [vmem:[#allocation2 + $0x48] sm:$0xff] }
  0x17   :  { %159 = vmatpush.msra.mxu1 %v152_v6  ;;  %v149_v11 = vld [vmem:[#allocation5 + $0x58] sm:$0xff]  ;;  %v105_v12 = vld [vmem:[#allocation2 + $0x40] sm:$0xff]  ;;  %v148_v13 = vld [vmem:[#allocation5 + $0x50] sm:$0xff] }
  0x18   :  { %119 = vmatpush.msra.mxu0 %v110_v2  ;;  %v104_v14 = vld [vmem:[#allocation2 + $0x38] sm:$0xff]  ;;  %v147_v15 = vld [vmem:[#allocation5 + $0x48] sm:$0xff]  ;;  %v103_v16 = vld [vmem:[#allocation2 + $0x30] sm:$0xff] }
  0x19   :  { %160 = vmatpush.msra.mxu1 %v151_v7  ;;  %v146_v17 = vld [vmem:[#allocation5 + $0x40] sm:$0xff]  ;;  %v102_v18 = vld [vmem:[#allocation2 + $0x28] sm:$0xff]  ;;  %v145_v19 = vld [vmem:[#allocation5 + $0x38] sm:$0xff] }
  0x1a   :  { %120 = vmatpush.msra.mxu0 %v109_v3  ;;  %v101_v20 = vld [vmem:[#allocation2 + $0x20] sm:$0xff]  ;;  %v144_v21 = vld [vmem:[#allocation5 + $0x30] sm:$0xff]  ;;  %v100_v22 = vld [vmem:[#allocation2 + $0x18] sm:$0xff] }
  0x1b   :  { %161 = vmatpush.msra.mxu1 %v150_v9  ;;  %v143_v23 = vld [vmem:[#allocation5 + $0x28] sm:$0xff]  ;;  %v99_v24 = vld [vmem:[#allocation2 + $0x10] sm:$0xff]  ;;  %v142_v25 = vld [vmem:[#allocation5 + $0x20] sm:$0xff] }
  0x1c   :  { %121 = vmatpush.msra.mxu0 %v108_v5  ;;  %v98_v26 = vld [vmem:[#allocation2 + $0x8] sm:$0xff]  ;;  %v141_v27 = vld [vmem:[#allocation5 + $0x18] sm:$0xff]  ;;  %v97_v28 = vld [vmem:[#allocation2] sm:$0xff] }
  0x1d   :  { %162 = vmatpush.msra.mxu1 %v149_v11  ;;  %v96_v29 = vld [vmem:[%s506_s0] sm:$0xff]  ;;  %v140_v30 = vld [vmem:[#allocation5 + $0x10] sm:$0xff]  ;;  %v139_v31 = vld [vmem:[#allocation5 + $0x8] sm:$0xff] }
  0x1e   :  { %122 = vmatpush.msra.mxu0 %v107_v8  ;;  %v138_v32 = vld [vmem:[#allocation5] sm:$0xff]  ;;  %v194_v33 = vld [vmem:[#allocation7 + $0x78] sm:$0xff]  ;;  %v193_v34 = vld [vmem:[#allocation7 + $0x70] sm:$0xff] }
  0x1f   :  { %163 = vmatpush.msra.mxu1 %v148_v13  ;;  %199 = vmatpush.msra.mxu2 %v194_v33  ;;  %v192_v35 = vld [vmem:[#allocation7 + $0x68] sm:$0xff]  ;;  %v191_v36 = vld [vmem:[#allocation7 + $0x60] sm:$0xff]  ;;  %v190_v37 = vld [vmem:[#allocation7 + $0x58] sm:$0xff] }
  0x20   :  { %123 = vmatpush.msra.mxu0 %v106_v10  ;;  %v189_v38 = vld [vmem:[#allocation7 + $0x50] sm:$0xff]  ;;  %v188_v39 = vld [vmem:[#allocation7 + $0x48] sm:$0xff]  ;;  %v187_v40 = vld [vmem:[#allocation7 + $0x40] sm:$0xff] }
  0x21   :  { %164 = vmatpush.msra.mxu1 %v147_v15  ;;  %200 = vmatpush.msra.mxu2 %v193_v34  ;;  %v186_v41 = vld [vmem:[#allocation7 + $0x38] sm:$0xff]  ;;  %v185_v42 = vld [vmem:[#allocation7 + $0x30] sm:$0xff]  ;;  %v184_v43 = vld [vmem:[#allocation7 + $0x28] sm:$0xff] }
  0x22   :  { %124 = vmatpush.msra.mxu0 %v105_v12  ;;  %v183_v44 = vld [vmem:[#allocation7 + $0x20] sm:$0xff]  ;;  %v182_v45 = vld [vmem:[#allocation7 + $0x18] sm:$0xff]  ;;  %v181_v50 = vld [vmem:[#allocation7 + $0x10] sm:$0xff] }
  0x23   :  { %165 = vmatpush.msra.mxu1 %v146_v17  ;;  %201 = vmatpush.msra.mxu2 %v192_v35  ;;  %v287_v46 = vld [vmem:[%s508_s2] ss:$0 sm:$0xff]  ;;  %v180_v51 = vld [vmem:[#allocation7 + $0x8] sm:$0xff]  ;;  %v235_v53 = vld [vmem:[#allocation8 + $0x78] sm:$0xff] }
  0x24   :  { %125 = vmatpush.msra.mxu0 %v104_v14  ;;  %v179_v52 = vld [vmem:[#allocation7] sm:$0xff]  ;;  %v234_v54 = vld [vmem:[#allocation8 + $0x70] sm:$0xff]  ;;  %240 = vmatpush.msra.mxu3 %v235_v53  ;;  %v233_v55 = vld [vmem:[#allocation8 + $0x68] sm:$0xff] }
  0x25   :  { %166 = vmatpush.msra.mxu1 %v145_v19  ;;  %202 = vmatpush.msra.mxu2 %v191_v36  ;;  %v232_v56 = vld [vmem:[#allocation8 + $0x60] sm:$0xff]  ;;  %v231_v57 = vld [vmem:[#allocation8 + $0x58] sm:$0xff]  ;;  %v230_v58 = vld [vmem:[#allocation8 + $0x50] sm:$0xff] }
  0x26   :  { %126 = vmatpush.msra.mxu0 %v103_v16  ;;  %241 = vmatpush.msra.mxu3 %v234_v54  ;;  %v229_v59 = vld [vmem:[#allocation8 + $0x48] sm:$0xff]  ;;  %v228_v60 = vld [vmem:[#allocation8 + $0x40] sm:$0xff]  ;;  %v227_v61 = vld [vmem:[#allocation8 + $0x38] sm:$0xff] }
  0x27   :  { %167 = vmatpush.msra.mxu1 %v144_v21  ;;  %203 = vmatpush.msra.mxu2 %v190_v37  ;;  %v226_v62 = vld [vmem:[#allocation8 + $0x30] sm:$0xff]  ;;  %v225_v63 = vld [vmem:[#allocation8 + $0x28] sm:$0xff]  ;;  %v224_v0 = vld [vmem:[#allocation8 + $0x20] sm:$0xff] }
  0x28   :  { %127 = vmatpush.msra.mxu0 %v102_v18  ;;  %242 = vmatpush.msra.mxu3 %v233_v55  ;;  %v223_v1 = vld [vmem:[#allocation8 + $0x18] sm:$0xff]  ;;  %v288_v2 = vld [vmem:[%s510_s4] ss:$0 sm:$0xff]  ;;  %v222_v6 = vld [vmem:[#allocation8 + $0x10] sm:$0xff] }
  0x29   :  { %168 = vmatpush.msra.mxu1 %v143_v23  ;;  %204 = vmatpush.msra.mxu2 %v189_v38  ;;  %v221_v7 = vld [vmem:[#allocation8 + $0x8] sm:$0xff]  ;;  %v220_v8 = vld [vmem:[#allocation8] sm:$0xff] }
  0x2a   :  { %128 = vmatpush.msra.mxu0 %v101_v20  ;;  %243 = vmatpush.msra.mxu3 %v232_v56  ;;  %v289_v9 = vld [vmem:[%s512_s6] ss:$0 sm:$0xff] }
  0x2b   :  { %169 = vmatpush.msra.mxu1 %v142_v25  ;;  %205 = vmatpush.msra.mxu2 %v188_v39  ;;  %v290_v13 = vld [vmem:[%s514_s8] ss:$0 sm:$0xff] }
  0x2c   :  { %129 = vmatpush.msra.mxu0 %v100_v22  ;;  %244 = vmatpush.msra.mxu3 %v231_v57 }
  0x2d   :  { %170 = vmatpush.msra.mxu1 %v141_v27  ;;  %206 = vmatpush.msra.mxu2 %v187_v40 }
  0x2e   :  { %130 = vmatpush.msra.mxu0 %v99_v24  ;;  %245 = vmatpush.msra.mxu3 %v230_v58 }
  0x2f   :  { %171 = vmatpush.msra.mxu1 %v140_v30  ;;  %207 = vmatpush.msra.mxu2 %v186_v41 }
  0x30   :  { %131 = vmatpush.msra.mxu0 %v98_v26  ;;  %246 = vmatpush.msra.mxu3 %v229_v59 }
  0x31   :  { %172 = vmatpush.msra.mxu1 %v139_v31  ;;  %208 = vmatpush.msra.mxu2 %v185_v42 }
  0x32   :  { %132 = vmatpush.msra.mxu0 %v97_v28  ;;  %247 = vmatpush.msra.mxu3 %v228_v60 }
  0x33   :  { %133 = vmatmul.f32.vlgmr.msra.gmra.mxu0 %v96_v29  ;;  %173 = vmatpush.msra.mxu1 %v138_v32 }
  0x34   :  { %209 = vmatpush.msra.mxu2 %v184_v43  ;;  %248 = vmatpush.msra.mxu3 %v227_v61 }
  0x36   :  { %210 = vmatpush.msra.mxu2 %v183_v44  ;;  %249 = vmatpush.msra.mxu3 %v226_v62 }
  0x38   :  { %211 = vmatpush.msra.mxu2 %v182_v45  ;;  %250 = vmatpush.msra.mxu3 %v225_v63 }
  0x3a   :  { %212 = vmatpush.msra.mxu2 %v181_v50  ;;  %251 = vmatpush.msra.mxu3 %v224_v0 }
  0x3c   :  { %213 = vmatpush.msra.mxu2 %v180_v51  ;;  %252 = vmatpush.msra.mxu3 %v223_v1 }
  0x3e   :  { %214 = vmatpush.msra.mxu2 %v179_v52  ;;  %253 = vmatpush.msra.mxu3 %v222_v6 }
  0x40   :  { %254 = vmatpush.msra.mxu3 %v221_v7 }
  0x42   :  { %255 = vmatpush.msra.mxu3 %v220_v8 }
  0xb0   :  { %v134_v47 = vpop.f32.mrf.mxu0 }
  0xb1   :  { %v135_v48 = vadd.f32 %v287_v46, %v134_v47 }
  0xb3   :  { %v137_v49 = vmax.f32 %v135_v48, 0.0 }
  0xb5   :  { %174 = vmatmul.f32.vlgmr.msra.gmra.mxu1 %v137_v49 }
 0x132   :  { %v175_v3 = vpop.f32.mrf.mxu1 }
 0x133   :  { %v176_v4 = vadd.f32 %v288_v2, %v175_v3 }
 0x135   :  { %v178_v5 = vmax.f32 %v176_v4, 0.0 }
 0x137   :  { %215 = vmatmul.f32.vlgmr.msra.gmra.mxu2 %v178_v5 }
 0x1ba   :  { %v216_v10 = vpop.f32.mrf.mxu2 }
 0x1bb   :  { %v217_v11 = vadd.f32 %v289_v9, %v216_v10 }
 0x1bd   :  { %v219_v12 = vmax.f32 %v217_v11, 0.0 }
 0x1bf   :  { %256 = vmatmul.f32.vlgmr.msra.gmra.mxu3 %v219_v12 }
 0x242   :  { %v257_v14 = vpop.f32.mrf.mxu3 }
 0x243   :  { %v258_v15 = vadd.f32 %v290_v13, %v257_v14 }
 0x245   :  { %260 = vst [vmem:[#allocation10] sm:$0xff] %v258_v15 }
 0x246   :  { %271 = dma.vmem_to_hbm [thread:$0]  %s267_s14, 128, %s269_s17, [#allocation4]  }
 0x247   :  { %417 = dma.done.wait [#allocation4], 128  }
 0x248   :  { %418 = vsyncadd [#allocation4], 4294967168 }
 0x249   :  { %276 = vsyncpa [#allocation3], 1 }
 0x24a   :  { %277 = vsyncpa [#allocation6], 1 }
 0x24b   :  { %278 = vsyncpa [#allocation9], 1 }
 0x24c   :  { %279 = vsyncpa [#allocation4], 1 }

</bundles_post_ra>
